<compile_context>
chip_gen: v7x
topology: tpu7x:2x2x1
jax: 0.10.0
libtpu: 0.0.40
codegen_flags: <defaults>
</compile_context>

<pallas_src>
import functools
import math

import jax
import jax.numpy as jnp
from jax import lax
from jax.experimental import pallas as pl
from jax.experimental.pallas import tpu as pltpu

_NEG_BIG = -1e30  # finite "-inf"


def _round_up(n, m):
    return ((n + m - 1) // m) * m


def _dims(n_features, hidden_dim, ffn_hidden):
    F, H, FH = n_features, hidden_dim, ffn_hidden
    return F, H, FH, _round_up(H, 128), _round_up(FH, 128), _round_up(F, 128)


# ---------------------------------------------------------------------------
# Weight packing: all parameters in one buffer; every logical section starts at a
# multiple of 128 columns; 1/sqrt(H) folded into the Q projections at pack time.
# ---------------------------------------------------------------------------
def _pack_layout(n_features, hidden_dim, ffn_hidden):
    F, H, FH, Hp, FHp, Fp = _dims(n_features, hidden_dim, ffn_hidden)
    blocks = [
        ("w_qkv_s", F, 3 * Hp),   # fused self-attn Q|K|V (Q pre-scaled), 128-aligned sections
        ("b_qkv_s", 1, 3 * Hp),
        ("w_kv_c", F, 2 * Hp),    # fused cross-attn K|V
        ("b_kv_c", 1, 2 * Hp),
        ("w_q_c", Hp, Hp),        # cross-attn Q (pre-scaled); zero-padded rows/cols
        ("b_q_c", 1, Hp),
        ("w1", Hp, FHp),          # FFN layer 1
        ("b1", 1, FHp),
        ("w2", FHp, Fp),          # FFN layer 2
        ("b2", 1, Fp),
    ]
    width = max(c for _, _, c in blocks)
    layout, row = {}, 0
    for name, r, c in blocks:
        layout[name] = (row, r, c)
        row += _round_up(r, 16)       # sublane-tile aligned for bf16 (16) and f32 (8)
    return layout, _round_up(row, 16), width


def pack_params(params, n_features, hidden_dim, ffn_hidden, compute_dtype):
    F, H, FH, Hp, FHp, Fp = _dims(n_features, hidden_dim, ffn_hidden)
    inv = 1.0 / math.sqrt(hidden_dim)

    def sectioned(pieces, n_rows, sec_w):
        blk = jnp.zeros((n_rows, sec_w * len(pieces)), jnp.float32)
        for i, p in enumerate(pieces):
            r, c = p.shape
            blk = blk.at[0:r, i * sec_w:i * sec_w + c].set(p.astype(jnp.float32))
        return blk

    blocks = {
        "w_qkv_s": sectioned([params["wq_s"] * inv, params["wk_s"], params["wv_s"]], F, Hp),
        "b_qkv_s": sectioned([params["bq_s"] * inv, params["bk_s"], params["bv_s"]], 1, Hp),
        "w_kv_c": sectioned([params["wk_c"], params["wv_c"]], F, Hp),
        "b_kv_c": sectioned([params["bk_c"], params["bv_c"]], 1, Hp),
        "w_q_c": sectioned([params["wq_c"] * inv], Hp, Hp),
        "b_q_c": sectioned([params["bq_c"] * inv], 1, Hp),
        "w1": sectioned([params["w1"]], Hp, FHp),
        "b1": sectioned([params["b1"]], 1, FHp),
        "w2": sectioned([params["w2"]], FHp, Fp),
        "b2": sectioned([params["b2"]], 1, Fp),
    }
    layout, rows, width = _pack_layout(n_features, hidden_dim, ffn_hidden)
    buf = jnp.zeros((rows, width), jnp.float32)
    for name, blk in blocks.items():
        r0, r, c = layout[name]
        buf = buf.at[r0:r0 + r, 0:c].set(blk)
    return buf.astype(compute_dtype)


# ---------------------------------------------------------------------------
# Kernel
# ---------------------------------------------------------------------------
def _softmax_lastdim(s, approx):
    m = jnp.max(s, axis=-1, keepdims=True)
    e = jnp.exp(s - m)
    return e * pl.reciprocal(jnp.sum(e, axis=-1, keepdims=True), approx=approx)


def decoder_attn_kernel(*refs, layout, hp, tq, causal, has_mask, compute_dtype, approx_recip):
    if has_mask:
        x_ref, enc_ref, mask_ref, w_ref, out_ref, qkv_s_ref, kv_c_ref = refs
    else:
        x_ref, enc_ref, w_ref, out_ref, qkv_s_ref, kv_c_ref = refs
        mask_ref = None

    qi = pl.program_id(1)

    def wget(name):
        r0, r, c = layout[name]
        return w_ref[r0:r0 + r, 0:c]                 # static, lane-aligned slice

    def bget(name):
        r0, r, c = layout[name]
        return w_ref[r0:r0 + 1, 0:c].astype(jnp.float32)

    def linear(v, wname, bname):                     # plain 2-D matmul, f32 accumulation
        return jnp.dot(v, wget(wname), preferred_element_type=jnp.float32) + bget(bname)

    # --- once per batch: project self-attn Q|K|V (whole sequence) and cross-attn K|V ---
    @pl.when(qi == 0)
    def _project_kv():
        qkv_s_ref[...] = linear(x_ref[...], "w_qkv_s", "b_qkv_s").astype(compute_dtype)
        kv_c_ref[...] = linear(enc_ref[...], "w_kv_c", "b_kv_c").astype(compute_dtype)

    # --- per query tile ---
    q0 = pl.multiple_of(qi * tq, tq)
    qkv_tile = qkv_s_ref[pl.ds(q0, tq), :]           # (tq, 3*Hp)
    Qs = qkv_tile[:, 0:hp]                           # lane-aligned splits (padded cols = 0)
    qkv_all = qkv_s_ref[...]
    Ks = qkv_all[:, hp:2 * hp]
    Vs = qkv_all[:, 2 * hp:3 * hp]

    # self attention (Q already scaled by 1/sqrt(H))
    s1 = lax.dot_general(Qs, Ks, (((1,), (1,)), ((), ())),
                         preferred_element_type=jnp.float32)        # (tq, S) f32
    if causal:
        row = q0 + lax.broadcasted_iota(jnp.int32, s1.shape, 0)
        col = lax.broadcasted_iota(jnp.int32, s1.shape, 1)
        s1 = jnp.where(row >= col, s1, _NEG_BIG)
    elif mask_ref is not None:
        s1 = jnp.where(mask_ref[...] > 0, s1, _NEG_BIG)
    p1 = _softmax_lastdim(s1, approx_recip).astype(compute_dtype)
    out1 = jnp.dot(p1, Vs, preferred_element_type=jnp.float32)       # (tq, Hp) f32

    # cross attention (keys/values from encoder states, no mask)
    kv_all = kv_c_ref[...]
    Kc = kv_all[:, 0:hp]
    Vc = kv_all[:, hp:2 * hp]
    Qc = linear(out1.astype(compute_dtype), "w_q_c", "b_q_c").astype(compute_dtype)
    s2 = lax.dot_general(Qc, Kc, (((1,), (1,)), ((), ())),
                         preferred_element_type=jnp.float32)         # (tq, Se) f32
    p2 = _softmax_lastdim(s2, approx_recip).astype(compute_dtype)
    out2 = jnp.dot(p2, Vc, preferred_element_type=jnp.float32)       # (tq, Hp) f32

    # FFN: Linear(H, FH) -> ReLU -> Linear(FH, F)    (all dims 128-padded)
    h = jnp.maximum(linear(out2.astype(compute_dtype), "w1", "b1"), 0.0)
    out_ref[...] = linear(h.astype(compute_dtype), "w2", "b2")       # (tq, Fp) f32


# ---------------------------------------------------------------------------
# Wrapper
# ---------------------------------------------------------------------------
def _pick_q_tile(seq_len):
    for tq in (512, 256, 128, 64, 32, 16, 8):
        if seq_len % tq == 0:
            return tq
    return seq_len                                   # single full-sequence tile fallback


def _vmem_limit_bytes(estimate):
    default_scoped = 32 * 1024 * 1024
    if estimate <= (default_scoped * 3) // 4:
        return None                                  # default scoped VMEM is plenty
    try:
        cap = pltpu.get_tpu_info().vmem_capacity_bytes   # 64 MiB on v7x, 128 MiB v5e/v6e
    except Exception:
        cap = 64 * 1024 * 1024
    return int(min(int(estimate * 1.5), int(cap * 0.9)))


def decoder_attn_forward(x, encoder_states, params, *, target_mask=None, causal=False,
                         compute_dtype=jnp.bfloat16):
    B, S, F = x.shape
    Se = encoder_states.shape[1]
    H = params["wq_s"].shape[1]
    FH = params["w1"].shape[1]
    # cross_attention.linear_query is Linear(n_features, H) applied to the H-dim
    # self-attention output -> only shape-valid when H == F (as in the PyTorch module).
    assert H == F, "DecoderAttn requires hidden_dim == n_features"
    assert params["w1"].shape[0] == H, "FFN first layer must take hidden_dim inputs"
    if causal and target_mask is not None:
        raise ValueError("pass either causal=True (in-kernel mask) or target_mask, not both")

    _, _, _, Hp, FHp, Fp = _dims(F, H, FH)
    layout, rows, width = _pack_layout(F, H, FH)
    packed = pack_params(params, F, H, FH, compute_dtype)

    tq = _pick_q_tile(S)
    num_q = S // tq
    has_mask = target_mask is not None

    x_c = x.astype(compute_dtype)
    enc_c = encoder_states.astype(compute_dtype)

    kernel = functools.partial(
        decoder_attn_kernel, layout=layout, hp=Hp, tq=tq, causal=causal,
        has_mask=has_mask, compute_dtype=compute_dtype,
        approx_recip=(compute_dtype != jnp.float32))

    in_specs = [
        pl.BlockSpec((None, S, F), lambda b, qi: (b, 0, 0)),     # x (resident per batch)
        pl.BlockSpec((None, Se, F), lambda b, qi: (b, 0, 0)),    # encoder states
    ]
    args = [x_c, enc_c]
    if has_mask:
        in_specs.append(pl.BlockSpec((tq, S), lambda b, qi: (qi, 0)))   # int8 mask tile
        args.append(target_mask.astype(jnp.int8))
    in_specs.append(pl.BlockSpec((rows, width), lambda b, qi: (0, 0)))  # packed params
    args.append(packed)

    # VMEM footprint estimate (double-buffered blocks + scratch + intermediates).
    isz = jnp.dtype(compute_dtype).itemsize
    est = (2 * (S * F + Se * F + rows * width) * isz
           + (2 * tq * S if has_mask else 0)
           + 2 * tq * Fp * 4
           + (S * 3 * Hp + Se * 2 * Hp) * isz
           + 4 * tq * (2 * S + 2 * Se + 2 * Hp + FHp + Fp))

    out3d = pl.pallas_call(
        kernel,
        out_shape=jax.ShapeDtypeStruct((B, S, Fp), jnp.float32),
        grid=(B, num_q),
        in_specs=in_specs,
        out_specs=pl.BlockSpec((None, tq, Fp), lambda b, qi: (b, qi, 0)),
        scratch_shapes=[pltpu.VMEM((S, 3 * Hp), compute_dtype),
                        pltpu.VMEM((Se, 2 * Hp), compute_dtype)],
        compiler_params=pltpu.CompilerParams(
            dimension_semantics=("parallel", "arbitrary"),
            vmem_limit_bytes=_vmem_limit_bytes(est)),
    )(*args)
    return out3d[:, :, :F]


# ---------------------------------------------------------------------------
# Parameter init + pure-JAX reference
# ---------------------------------------------------------------------------
def init_params(key, n_features, hidden_dim, ffn_hidden=64):
    # Deterministic init mimicking nn.Linear default: U(-1/sqrt(in), 1/sqrt(in)).
    keys = jax.random.split(key, 16)

    def linear_params(kw, kb, in_dim, out_dim):
        bound = 1.0 / math.sqrt(in_dim)
        w = jax.random.uniform(kw, (in_dim, out_dim), jnp.float32, -bound, bound)
        b = jax.random.uniform(kb, (1, out_dim), jnp.float32, -bound, bound)
        return w, b

    p = {}
    for i, name in enumerate(["q_s", "k_s", "v_s", "q_c", "k_c", "v_c"]):
        w, b = linear_params(keys[2 * i], keys[2 * i + 1], n_features, hidden_dim)
        p["w" + name], p["b" + name] = w, b
    p["w1"], p["b1"] = linear_params(keys[12], keys[13], hidden_dim, ffn_hidden)
    p["w2"], p["b2"] = linear_params(keys[14], keys[15], ffn_hidden, n_features)
    return p


def reference_forward(x, enc, mask, p, hidden_dim):
    # Pure-JAX reference matching the PyTorch forward semantics (f32).
    def lin(v, w, b):
        return v @ w + b

    Ks = lin(x, p["wk_s"], p["bk_s"])
    Vs = lin(x, p["wv_s"], p["bv_s"])
    Qs = lin(x, p["wq_s"], p["bq_s"])
    s1 = (Qs @ jnp.swapaxes(Ks, -2, -1)) / math.sqrt(hidden_dim)
    s1 = jnp.where(mask[None], s1, -jnp.inf)
    out1 = jax.nn.softmax(s1, axis=-1) @ Vs

    Kc = lin(enc, p["wk_c"], p["bk_c"])
    Vc = lin(enc, p["wv_c"], p["bv_c"])
    Qc = lin(out1, p["wq_c"], p["bq_c"])
    s2 = (Qc @ jnp.swapaxes(Kc, -2, -1)) / math.sqrt(hidden_dim)
    out2 = jax.nn.softmax(s2, axis=-1) @ Vc

    h = jnp.maximum(lin(out2, p["w1"], p["b1"]), 0.0)
    return lin(h, p["w2"], p["b2"])


if __name__ == "__main__":
    # ffn starts with Linear(2, 64) and cross-attn's query Linear(n_features, .) consumes
    # the H-dim attention output, so n_features == hidden_dim == 2.
    n_features, hidden_dim, ffn_hidden = 2, 2, 64
    B, S, Se = 2, 8, 8

    key = jax.random.PRNGKey(0)
    k_params, k_x, k_enc = jax.random.split(key, 3)
    params = init_params(k_params, n_features, hidden_dim, ffn_hidden)
    x = jax.random.normal(k_x, (B, S, n_features), jnp.float32)
    encoder_states = jax.random.normal(k_enc, (B, Se, n_features), jnp.float32)
    target_mask = jnp.tril(jnp.ones((S, S), dtype=bool))   # causal mask, as in the docstring

    ref = reference_forward(x, encoder_states, target_mask, params, hidden_dim)

    # f32 verification path (exact math on the padded/fused layout), in-kernel causal mask.
    out_f32 = jax.block_until_ready(
        decoder_attn_forward(x, encoder_states, params, causal=True,
                             compute_dtype=jnp.float32))
    assert out_f32.shape == (B, S, n_features)
    assert jnp.allclose(out_f32, ref, rtol=1e-4, atol=1e-4)

    # Fast path: bf16 MXU operands, f32 accumulation, in-kernel causal mask.
    out_bf16 = jax.block_until_ready(
        decoder_attn_forward(x, encoder_states, params, causal=True))
    assert out_bf16.shape == (B, S, n_features)
    assert jnp.allclose(out_bf16, ref, rtol=5e-2, atol=5e-2)

    # General path: explicit (arbitrary) mask passed as a compact int8 input.
    out_m = jax.block_until_ready(
        decoder_attn_forward(x, encoder_states, params, target_mask=target_mask))
    assert jnp.allclose(out_m, ref, rtol=5e-2, atol=5e-2)

    print("KERNEL_OK")
</pallas_src>

<mosaic_0001>
module attributes {stable_mosaic.version = 11 : i64} {
  func.func @decoder_attn_kernel(%arg0: i32, %arg1: i32, %arg2: memref<1x8x2xf32, #tpu.memory_space<vmem>>, %arg3: memref<1x8x2xf32, #tpu.memory_space<vmem>>, %arg4: memref<496x384xf32, #tpu.memory_space<vmem>>, %arg5: memref<1x8x128xf32, #tpu.memory_space<vmem>>, %arg6: memref<8x384xf32, #tpu.memory_space<vmem>>, %arg7: memref<8x256xf32, #tpu.memory_space<vmem>>) attributes {dimension_semantics = [#tpu.dimension_semantics<parallel>, #tpu.dimension_semantics<arbitrary>], iteration_bounds = array<i64: 2, 1>, scalar_prefetch = 0 : i64, scratch_operands = 2 : i64, tpu.core_type = #tpu.core_type<tc>, window_params = [{transform_indices = @transform_0, window_bounds = array<i64: 1, 8, 2>}, {transform_indices = @transform_1, window_bounds = array<i64: 1, 8, 2>}, {pipeline_mode = #tpu.pipeline_mode<synchronous>, transform_indices = @transform_2, window_bounds = array<i64: 496, 384>}, {transform_indices = @transform_3, window_bounds = array<i64: 1, 8, 128>}]} {
    %c0_i32 = arith.constant 0 : i32
    %0 = arith.cmpi eq, %arg1, %c0_i32 : i32
    %1 = arith.extui %0 : i1 to i32
    %c0_i32_0 = arith.constant 0 : i32
    %2 = arith.cmpi ne, %1, %c0_i32_0 : i32
    scf.if %2 {
      %c0_26 = arith.constant 0 : index
      %c0_27 = arith.constant 0 : index
      %c0_28 = arith.constant 0 : index
      %65 = vector.load %arg2[%c0_26, %c0_27, %c0_28] : memref<1x8x2xf32, #tpu.memory_space<vmem>>, vector<1x8x2xf32>
      %66 = vector.shape_cast %65 : vector<1x8x2xf32> to vector<8x2xf32>
      %c0_29 = arith.constant 0 : index
      %c0_30 = arith.constant 0 : index
      %67 = vector.load %arg4[%c0_29, %c0_30] : memref<496x384xf32, #tpu.memory_space<vmem>>, vector<2x384xf32>
      %cst_31 = arith.constant dense<0.000000e+00> : vector<8x384xf32>
      %68 = tpu.matmul %66, %67, %cst_31 {dimension_numbers = #tpu.dot_dimension_numbers<[1], [0], [0], [1], [0, 0, 1, 1], [], []>} : vector<8x2xf32>, vector<2x384xf32>, vector<8x384xf32> -> vector<8x384xf32>
      %c16 = arith.constant 16 : index
      %c0_32 = arith.constant 0 : index
      %69 = vector.load %arg4[%c16, %c0_32] : memref<496x384xf32, #tpu.memory_space<vmem>>, vector<1x384xf32>
      %70 = vector.broadcast %69 : vector<1x384xf32> to vector<8x384xf32>
      %71 = arith.addf %68, %70 : vector<8x384xf32>
      %c0_33 = arith.constant 0 : index
      %c0_34 = arith.constant 0 : index
      %72 = vector.load %arg6[%c0_33, %c0_34] : memref<8x384xf32, #tpu.memory_space<vmem>>, vector<8x384xf32>
      tpu.vector_store %arg6[%c0_33, %c0_34], %71 {strides = array<i32>} : memref<8x384xf32, #tpu.memory_space<vmem>>, vector<8x384xf32>,
      %c0_35 = arith.constant 0 : index
      %c0_36 = arith.constant 0 : index
      %c0_37 = arith.constant 0 : index
      %73 = vector.load %arg3[%c0_35, %c0_36, %c0_37] : memref<1x8x2xf32, #tpu.memory_space<vmem>>, vector<1x8x2xf32>
      %74 = vector.shape_cast %73 : vector<1x8x2xf32> to vector<8x2xf32>
      %c32 = arith.constant 32 : index
      %c0_38 = arith.constant 0 : index
      %75 = vector.load %arg4[%c32, %c0_38] : memref<496x384xf32, #tpu.memory_space<vmem>>, vector<2x256xf32>
      %cst_39 = arith.constant dense<0.000000e+00> : vector<8x256xf32>
      %76 = tpu.matmul %74, %75, %cst_39 {dimension_numbers = #tpu.dot_dimension_numbers<[1], [0], [0], [1], [0, 0, 1, 1], [], []>} : vector<8x2xf32>, vector<2x256xf32>, vector<8x256xf32> -> vector<8x256xf32>
      %c48 = arith.constant 48 : index
      %c0_40 = arith.constant 0 : index
      %77 = vector.load %arg4[%c48, %c0_40] : memref<496x384xf32, #tpu.memory_space<vmem>>, vector<1x256xf32>
      %78 = vector.broadcast %77 : vector<1x256xf32> to vector<8x256xf32>
      %79 = arith.addf %76, %78 : vector<8x256xf32>
      %c0_41 = arith.constant 0 : index
      %c0_42 = arith.constant 0 : index
      %80 = vector.load %arg7[%c0_41, %c0_42] : memref<8x256xf32, #tpu.memory_space<vmem>>, vector<8x256xf32>
      tpu.vector_store %arg7[%c0_41, %c0_42], %79 {strides = array<i32>} : memref<8x256xf32, #tpu.memory_space<vmem>>, vector<8x256xf32>,
    } else {
    }
    %c8_i32 = arith.constant 8 : i32
    %3 = arith.muli %arg1, %c8_i32 : i32
    %4 = tpu.assume_multiple %3, 8 : i32
    %5 = arith.index_cast %4 : i32 to index
    %c0 = arith.constant 0 : index
    %6 = vector.load %arg6[%5, %c0] : memref<8x384xf32, #tpu.memory_space<vmem>>, vector<8x384xf32>
    %7 = vector.extract_strided_slice %6 {offsets = [0, 0], sizes = [8, 128], strides = [1, 1]} : vector<8x384xf32> to vector<8x128xf32>
    %c0_1 = arith.constant 0 : index
    %c0_2 = arith.constant 0 : index
    %8 = vector.load %arg6[%c0_1, %c0_2] : memref<8x384xf32, #tpu.memory_space<vmem>>, vector<8x384xf32>
    %9 = vector.extract_strided_slice %8 {offsets = [0, 128], sizes = [8, 128], strides = [1, 1]} : vector<8x384xf32> to vector<8x128xf32>
    %10 = vector.extract_strided_slice %8 {offsets = [0, 256], sizes = [8, 128], strides = [1, 1]} : vector<8x384xf32> to vector<8x128xf32>
    %cst = arith.constant dense<0.000000e+00> : vector<8x8xf32>
    %11 = tpu.matmul %7, %9, %cst {dimension_numbers = #tpu.dot_dimension_numbers<[1], [1], [0], [0], [0, 0, 1, 0], [], []>} : vector<8x128xf32>, vector<8x128xf32>, vector<8x8xf32> -> vector<8x8xf32>
    %12 = tpu.iota {dimensions = array<i32: 0>} : vector<8x8xi32>
    %13 = vector.broadcast %4 : i32 to vector<8x8xi32>
    %14 = arith.addi %13, %12 : vector<8x8xi32>
    %15 = tpu.iota {dimensions = array<i32: 1>} : vector<8x8xi32>
    %16 = arith.cmpi sge, %14, %15 : vector<8x8xi32>
    %cst_3 = arith.constant -1.000000e+30 : f32
    %17 = vector.broadcast %cst_3 : f32 to vector<8x8xf32>
    %18 = arith.select %16, %11, %17 : vector<8x8xi1>, vector<8x8xf32>
    %cst_4 = arith.constant dense<0xFF800000> : vector<8xf32>
    %19 = vector.multi_reduction <maximumf>, %18, %cst_4 [1] : vector<8x8xf32> to vector<8xf32>
    %20 = vector.shape_cast %19 : vector<8xf32> to vector<8x1xf32>
    %21 = vector.broadcast %20 : vector<8x1xf32> to vector<8x8xf32>
    %22 = arith.subf %18, %21 : vector<8x8xf32>
    %23 = math.exp %22 : vector<8x8xf32>
    %cst_5 = arith.constant dense<0.000000e+00> : vector<8xf32>
    %24 = vector.multi_reduction <add>, %23, %cst_5 [1] : vector<8x8xf32> to vector<8xf32>
    %25 = vector.shape_cast %24 : vector<8xf32> to vector<8x1xf32>
    %26 = tpu.reciprocal %25 : vector<8x1xf32> -> vector<8x1xf32>
    %27 = vector.broadcast %26 : vector<8x1xf32> to vector<8x8xf32>
    %28 = arith.mulf %23, %27 : vector<8x8xf32>
    %cst_6 = arith.constant dense<0.000000e+00> : vector<8x128xf32>
    %29 = tpu.matmul %28, %10, %cst_6 {dimension_numbers = #tpu.dot_dimension_numbers<[1], [0], [0], [1], [0, 0, 1, 1], [], []>} : vector<8x8xf32>, vector<8x128xf32>, vector<8x128xf32> -> vector<8x128xf32>
    %c0_7 = arith.constant 0 : index
    %c0_8 = arith.constant 0 : index
    %30 = vector.load %arg7[%c0_7, %c0_8] : memref<8x256xf32, #tpu.memory_space<vmem>>, vector<8x256xf32>
    %31 = vector.extract_strided_slice %30 {offsets = [0, 0], sizes = [8, 128], strides = [1, 1]} : vector<8x256xf32> to vector<8x128xf32>
    %32 = vector.extract_strided_slice %30 {offsets = [0, 128], sizes = [8, 128], strides = [1, 1]} : vector<8x256xf32> to vector<8x128xf32>
    %c64 = arith.constant 64 : index
    %c0_9 = arith.constant 0 : index
    %33 = vector.load %arg4[%c64, %c0_9] : memref<496x384xf32, #tpu.memory_space<vmem>>, vector<128x128xf32>
    %cst_10 = arith.constant dense<0.000000e+00> : vector<8x128xf32>
    %34 = tpu.matmul %29, %33, %cst_10 {dimension_numbers = #tpu.dot_dimension_numbers<[1], [0], [0], [1], [0, 0, 1, 1], [], []>} : vector<8x128xf32>, vector<128x128xf32>, vector<8x128xf32> -> vector<8x128xf32>
    %c192 = arith.constant 192 : index
    %c0_11 = arith.constant 0 : index
    %35 = vector.load %arg4[%c192, %c0_11] : memref<496x384xf32, #tpu.memory_space<vmem>>, vector<1x128xf32>
    %36 = vector.broadcast %35 : vector<1x128xf32> to vector<8x128xf32>
    %37 = arith.addf %34, %36 : vector<8x128xf32>
    %cst_12 = arith.constant dense<0.000000e+00> : vector<8x8xf32>
    %38 = tpu.matmul %37, %31, %cst_12 {dimension_numbers = #tpu.dot_dimension_numbers<[1], [1], [0], [0], [0, 0, 1, 0], [], []>} : vector<8x128xf32>, vector<8x128xf32>, vector<8x8xf32> -> vector<8x8xf32>
    %cst_13 = arith.constant dense<0xFF800000> : vector<8xf32>
    %39 = vector.multi_reduction <maximumf>, %38, %cst_13 [1] : vector<8x8xf32> to vector<8xf32>
    %40 = vector.shape_cast %39 : vector<8xf32> to vector<8x1xf32>
    %41 = vector.broadcast %40 : vector<8x1xf32> to vector<8x8xf32>
    %42 = arith.subf %38, %41 : vector<8x8xf32>
    %43 = math.exp %42 : vector<8x8xf32>
    %cst_14 = arith.constant dense<0.000000e+00> : vector<8xf32>
    %44 = vector.multi_reduction <add>, %43, %cst_14 [1] : vector<8x8xf32> to vector<8xf32>
    %45 = vector.shape_cast %44 : vector<8xf32> to vector<8x1xf32>
    %46 = tpu.reciprocal %45 : vector<8x1xf32> -> vector<8x1xf32>
    %47 = vector.broadcast %46 : vector<8x1xf32> to vector<8x8xf32>
    %48 = arith.mulf %43, %47 : vector<8x8xf32>
    %cst_15 = arith.constant dense<0.000000e+00> : vector<8x128xf32>
    %49 = tpu.matmul %48, %32, %cst_15 {dimension_numbers = #tpu.dot_dimension_numbers<[1], [0], [0], [1], [0, 0, 1, 1], [], []>} : vector<8x8xf32>, vector<8x128xf32>, vector<8x128xf32> -> vector<8x128xf32>
    %c208 = arith.constant 208 : index
    %c0_16 = arith.constant 0 : index
    %50 = vector.load %arg4[%c208, %c0_16] : memref<496x384xf32, #tpu.memory_space<vmem>>, vector<128x128xf32>
    %cst_17 = arith.constant dense<0.000000e+00> : vector<8x128xf32>
    %51 = tpu.matmul %49, %50, %cst_17 {dimension_numbers = #tpu.dot_dimension_numbers<[1], [0], [0], [1], [0, 0, 1, 1], [], []>} : vector<8x128xf32>, vector<128x128xf32>, vector<8x128xf32> -> vector<8x128xf32>
    %c336 = arith.constant 336 : index
    %c0_18 = arith.constant 0 : index
    %52 = vector.load %arg4[%c336, %c0_18] : memref<496x384xf32, #tpu.memory_space<vmem>>, vector<1x128xf32>
    %53 = vector.broadcast %52 : vector<1x128xf32> to vector<8x128xf32>
    %54 = arith.addf %51, %53 : vector<8x128xf32>
    %cst_19 = arith.constant 0.000000e+00 : f32
    %55 = vector.broadcast %cst_19 : f32 to vector<8x128xf32>
    %56 = arith.maximumf %54, %55 : vector<8x128xf32>
    %c352 = arith.constant 352 : index
    %c0_20 = arith.constant 0 : index
    %57 = vector.load %arg4[%c352, %c0_20] : memref<496x384xf32, #tpu.memory_space<vmem>>, vector<128x128xf32>
    %cst_21 = arith.constant dense<0.000000e+00> : vector<8x128xf32>
    %58 = tpu.matmul %56, %57, %cst_21 {dimension_numbers = #tpu.dot_dimension_numbers<[1], [0], [0], [1], [0, 0, 1, 1], [], []>} : vector<8x128xf32>, vector<128x128xf32>, vector<8x128xf32> -> vector<8x128xf32>
    %c480 = arith.constant 480 : index
    %c0_22 = arith.constant 0 : index
    %59 = vector.load %arg4[%c480, %c0_22] : memref<496x384xf32, #tpu.memory_space<vmem>>, vector<1x128xf32>
    %60 = vector.broadcast %59 : vector<1x128xf32> to vector<8x128xf32>
    %61 = arith.addf %58, %60 : vector<8x128xf32>
    %c0_23 = arith.constant 0 : index
    %c0_24 = arith.constant 0 : index
    %c0_25 = arith.constant 0 : index
    %62 = vector.load %arg5[%c0_23, %c0_24, %c0_25] : memref<1x8x128xf32, #tpu.memory_space<vmem>>, vector<1x8x128xf32>
    %63 = vector.shape_cast %62 : vector<1x8x128xf32> to vector<8x128xf32>
    %64 = vector.shape_cast %61 : vector<8x128xf32> to vector<1x8x128xf32>
    tpu.vector_store %arg5[%c0_23, %c0_24, %c0_25], %64 {strides = array<i32>} : memref<1x8x128xf32, #tpu.memory_space<vmem>>, vector<1x8x128xf32>,
    return
  }
  func.func @transform_0(%arg0: i32, %arg1: i32) -> (i32, i32, i32) {
    %c0_i32 = arith.constant 0 : i32
    %c0_i32_0 = arith.constant 0 : i32
    %c0_i32_1 = arith.constant 0 : i32
    return %arg0, %c0_i32, %c0_i32_0 : i32, i32, i32
  }
  func.func @transform_1(%arg0: i32, %arg1: i32) -> (i32, i32, i32) {
    %c0_i32 = arith.constant 0 : i32
    %c0_i32_0 = arith.constant 0 : i32
    %c0_i32_1 = arith.constant 0 : i32
    return %arg0, %c0_i32, %c0_i32_0 : i32, i32, i32
  }
  func.func @transform_2(%arg0: i32, %arg1: i32) -> (i32, i32) {
    %c0_i32 = arith.constant 0 : i32
    %c0_i32_0 = arith.constant 0 : i32
    %c0_i32_1 = arith.constant 0 : i32
    return %c0_i32, %c0_i32_0 : i32, i32
  }
  func.func @transform_3(%arg0: i32, %arg1: i32) -> (i32, i32, i32) {
    %c0_i32 = arith.constant 0 : i32
    %c0_i32_0 = arith.constant 0 : i32
    return %arg0, %arg1, %c0_i32 : i32, i32, i32
  }
}

</mosaic_0001>

<bundles_post_ra>
// kernel: tpu_custom_call.1
= control target key start
LH: loop header
LB: loop body
LE: loop exit
PB: predicated region body
PF: predicated region fallthrough
CT: control target
= control target key end

     0   :  { %8 = vsyncpa [#allocation5], 0  ;;  %s1933_s0 = inlined_call_operand.vmem [shape: f32[2,8,2], index: 0, kind: input, shape index: {}]   ;;  %s1934_s1 = inlined_call_operand.vmem [shape: f32[2,8,2], index: 1, kind: input, shape index: {}]   ;;  %s1935_s2 = inlined_call_operand.hbm [shape: f32[496,384], index: 2, kind: input, shape index: {}]   ;;  %s1936_s3 = inlined_call_operand.hbm [shape: f32[2,8,128], index: 3, kind: output, shape index: {}]  }
   0x1   :  { %9 = vsyncpa [#allocation6], 0 }
   0x2   :  { %11 = vsyncpa [#allocation6 + $0x1], 0  ;;  %s1699_s12 = smov 0   ;;  %s1701_s13 = smov 0  }
   0x3   :  { %s1703_s14 = smov 0   ;;  %s1705_s15 = smov 0  }
   0x4   :  { %s1707_s16 = smov 0   ;;  %s1709_s17 = smov 0  }
   0x5 LB: > { %s1194_s18 = sadd.s32 4294967295, %s1670_s17   ;;  %s1195_s19 = sadd.s32 4294967294, %s1670_s17   ;;  %s1670_s17 = sphi %s1709_s17, %s17_s17   ;;  %s1666_s16 = sphi %s1707_s16, %s1954_s16   ;;  %s1662_s15 = sphi %s1705_s15, %s1953_s15   ;;  %s1658_s14 = sphi %s1703_s14, %s1952_s14   ;;  %s1654_s13 = sphi %s1701_s13, %s1951_s13   ;;  %s1650_s12 = sphi %s1699_s12, %s1950_s12  }
   0x6   : > { %s29_s20 = sadd.s32 1, %s1666_s16  ;;  %s111_s21 = sadd.s32 1, %s1658_s14 }
   0x7   : > { %p31_p0 = scmp.ge.s32.totalorder %s29_s20, 2  ;;  %p121_p1 = scmp.ne.s32.totalorder %s1658_s14, %s1654_s13 }
   0x8   : > { %p122_p2 = scmp.eq.s32.totalorder %s1194_s18, 1  ;;  %p127_p3 = scmp.ne.s32.totalorder %s1654_s13, %s1650_s12 }
   0x9   : > { %s1956_s20 = smov (%p31_p0, %s29_s20), 0  ;;  %p128_p5 = scmp.eq.s32.totalorder %s1195_s19, 1 }
   0xa   : > { %p1739_p4 = por %p122_p2, %p121_p1  ;;  %s106_s23 = ssub.s32 %s1666_s16, %s1956_s20 }
   0xb   : > { %p1196_p6 = scmp.ge.s32.totalorder %s1670_s17, 1  ;;  %p109_p7 = scmp.eq.s32.totalorder %s106_s23, 0 }
   0xc   : > { %s1941_s22 = scalar_select %p1739_p4, 1, 0 }
   0xd   : > { %p1746_p8 = por %p128_p5, %p127_p3  ;;  %p135_p9 = scmp.lt.s32.totalorder %s1670_s17, 3 }
   0xe   : > { %s1752_s25 = scalar_select %p109_p7, %s1658_s14, %s111_s21  }
   0xf   : > { %s1942_s24 = scalar_select %p1746_p8, 1, 0 }
  0x10   : > { %p1754_p10 = pnand %p1196_p6, %p135_p9  ;;  %p1758_p11 = scmp.eq.s32.totalorder %s1194_s18, 0 }
  0x11   : > { %s1672_s28 = smov [#allocation4]   ;;  %s1560_s6 = scalar_lea.hbm %s1935_s2, 23808 }
  0x12   : > { %s1943_s26 = scalar_select %p1754_p10, 1, 0 }
  0x13   : > { %s1944_s27 = scalar_select %p1758_p11, 1, 0 }
  0x14   : > { %p1487_p12 = pneg %p1754_p10  ;;  %s147_s29 = sshll.u32 %s1672_s28, 4  ;;  %s148_s29 = int_to_ptr.vmem [resolvable:$true] %s147_s29 }
  0x15   : > { %p1561_p0 = scmp.ne.s32.totalorder %s1935_s2, %s1560_s6  ;;  %p1567_p5 = scmp.lt.u32.totalorder %s1560_s6, %s1935_s2 }
  0x16   : > { %p1766_p13 = pnand %p1758_p11, %p1487_p12 }
  0x18   : > { %p1562_p1 = pneg %p1766_p13 }
  0x1a   : > { %p1563_p2 = pnand %p1562_p1, %p1561_p0 }
  0x1c   : > { %p1564_p3 = pneg %p1563_p2 }
  0x1e   : > { %p1569_p6 = pnand %p1567_p5, %p1564_p3 }
  0x20   : > { %1572 = shalt.err (!%p1569_p6)
}
  0x21   : > { %s1573_s11 = scalar_lea.vmem %s148_s29, 23808  ;;  %p1581_p8 = scmp.lt.s32.totalorder %s148_s29, %s148_s29 }
  0x22   : > { %p1574_p7 = scmp.ne.s32.totalorder %s148_s29, %s1573_s11  ;;  %p1582_p4 = scmp.lt.s32.totalorder %s1573_s11, %s1573_s11 }
  0x24   : > { %p1576_p9 = pnand %p1574_p7, %p1562_p1  ;;  %p1583_p11 = por %p1582_p4, %p1581_p8 }
  0x26   : > { %p1577_p12 = pneg %p1576_p9 }
  0x28   : > { %p1584_p10 = pnand %p1583_p11, %p1577_p12 }
  0x2a   : > { %1587 = shalt.err (!%p1584_p10)
}
  0x2b   : > { %s1673_s18 = smov 384   ;;  %s1674_s19 = smov 24  }
  0x2c   : > { %1490 = dma.hbm_to_vmem [thread:$0]  (!%p1766_p13), %s1935_s2, 23808, %s148_s29, [#allocation5], %s1673_s18, %s1673_s18, %s1674_s19  }
  0x2d   : > { %p1946_p0 = scmp.ne.s32.totalorder %s1943_s26, 0 }
  0x2e   : > { %p1947_p2 = scmp.ne.s32.totalorder (!%p1946_p0), %s1944_s27, 0 }
  0x2f   : > { %177 = sbr.rel (%p1946_p0) target bundleno = 2415 (0x96f), region = 32 }
  0x36   : > { %1641 = dma.done.wait (%p1947_p2), [#allocation5], 23808  }
  0x37   : > { %1643 = vsyncadd (%p1947_p2), [#allocation5], 4294943488  ;;  %p204_p4 = scmp.lt.s32.totalorder %s1662_s15, 1  ;;  %v1675_v0 = vmov 0.0   ;;  %vm1676_vm0 = vmmov 0   ;;  %vm242_vm1 = vcmask 1041408   ;;  %v223_v8 = vlaneseq }
  0x38   : > { %316 = vmatprep.mubr.f32.mxu0 %v1675_v0  ;;  %1326 = vmatprep.mubr.msk.f32.mxu1 %vm1676_vm0, %v1675_v0  ;;  %v218_v1 = vld [vmem:[#allocation4 + $0x8] sm:$0x3]  ;;  %v217_v2 = vld [vmem:[#allocation4] sm:$0x3]  ;;  %vm238_vm2 = vcmask 15360   ;;  %vm581_vm4 = vcmask 64512  }
  0x39   : > { %s205_s28 = scalar_select %p204_p4, %s1662_s15, 1  ;;  %1204 = vmatprep.subr.msk.mxu0 %vm242_vm1, %v218_v1  ;;  %v219_v4 = vld [vmem:[#allocation4 + $0x10] sm:$0x3]  ;;  %v398_v5 = vld [vmem:[#allocation4 + $0x68] sm:$0x3]  ;;  %v1818_v9 = vshrl.u32 %v223_v8, 7 }
  0x3a   : > { %1205 = vmatpush1.msk.msra.mxu0 %vm242_vm1, %v217_v2  ;;  %v397_v6 = vld [vmem:[#allocation4 + $0x60] sm:$0x3]  ;;  %v578_v26 = vand.u32 127, %v223_v8  ;;  %v669_v37 = vld [vmem:[#allocation4 + $0xd8] sm:$0xff]  ;;  %v670_v38 = vld [vmem:[#allocation4 + $0xf0] sm:$0xff]  ;;  %v1677_v39 = vmov 0.0|0.0  }
  0x3b   : > { %s1202_s29 = sshll.u32 %s205_s28, 3  ;;  %1279 = vmatprep.subr.mxu0 %v1675_v0  ;;  %v229_v10 = vsub.s32 1, %v1818_v9  ;;  %v221_v11 = vld [vmem:[#allocation4 + $0x30] ss:$8 sm:$0x7]  ;;  %v225_v12 = vsub.s32 0, %v1818_v9  ;;  %1409 = vmatprep.subr.bf16.mxu1 %v1677_v39 }
  0x3c   : > { %s207_s4 = scalar_lea.vmem %s1933_s0, %s1202_s29  ;;  %s211_s6 = scalar_lea.vmem %s1934_s1, %s1202_s29  ;;  %v233_v13 = vsub.s32 2, %v1818_v9  ;;  %vm579_vm3 = vcmp.ge.s32.totalorder %v1818_v9, %v578_v26  ;;  %v668_v36 = vld [vmem:[#allocation4 + $0xc0] sm:$0xff]  ;;  %v671_v41 = vld [vmem:[#allocation4 + $0x108] sm:$0xff]  ;;  %v673_v44 = vld [vmem:[#allocation4 + $0x138] sm:$0xff] }
  0x3d   : > { %v216_v3 = vld [vmem:[%s207_s4] sm:$0xff]  ;;  %v230_v14 = vrot.slane %v221_v11, %v229_v10  ;;  %v226_v16 = vrot.slane %v221_v11, %v225_v12  ;;  %v1410_v40 = vpack.c.bf16 %v669_v37, %v668_v36  ;;  %v1413_v42 = vpack.c.bf16 %v671_v41, %v670_v38  ;;  %v674_v46 = vld [vmem:[#allocation4 + $0x150] sm:$0xff]  ;;  %v675_v47 = vld [vmem:[#allocation4 + $0x168] sm:$0xff]  ;;  %s201_s7 = sand.u32 1, %s1654_s13   ;;  %s1215_s9 = sshll.u32 %s1662_s15, 7 }
  0x3e   : > { %1206 = vmatmul.mubr.msk.f32.vlgmr.msra.gmra.mrb[0].mxu0 %vm238_vm2, %v216_v3  ;;  %v396_v7 = vld [vmem:[%s211_s6] sm:$0xff]  ;;  %v234_v18 = vrot.slane %v221_v11, %v233_v13  ;;  %v1419_v48 = vpack.c.bf16 %v675_v47, %v674_v46  ;;  %v677_v50 = vld [vmem:[#allocation4 + $0x198] sm:$0xff]  ;;  %v678_v52 = vld [vmem:[#allocation4 + $0x1b0] sm:$0xff]  ;;  %s1201_s8 = sshll.u32 %s201_s7, 3  ;;  %s1886_s21 = scalar_lea.hbm %s1936_s3, %s1215_s9 }
  0x3f   : > { %1280 = vmatpush3.msk.msra.mxu0 %vm242_vm1, %v219_v4  ;;  %1281 = vmatprep.mubr.msk.f32.mxu0 %vm1676_vm0, %v1675_v0  ;;  %v672_v43 = vld [vmem:[#allocation4 + $0x120] sm:$0xff]  ;;  %v679_v53 = vld [vmem:[#allocation4 + $0x1c8] sm:$0xff]  ;;  %v681_v56 = vld [vmem:[#allocation4 + $0x1f8] sm:$0xff]  ;;  %s203_s10 = scalar_lea.vmem [#allocation7], %s1201_s8  ;;  %s1086_s23 = scalar_lea.sflag [#allocation6], %s201_s7 }
  0x40   : > { %1209 = vmatprep.subr.msk.mxu0 %vm242_vm1, %v398_v5  ;;  %1411 = vmatpush3.bf16.msra.mxu1 %v1410_v40  ;;  %v1416_v45 = vpack.c.bf16 %v673_v44, %v672_v43  ;;  %v676_v49 = vld [vmem:[#allocation4 + $0x180] sm:$0xff]  ;;  %v1425_v54 = vpack.c.bf16 %v679_v53, %v678_v52  ;;  %v682_v58 = vld [vmem:[#allocation4 + $0x210] sm:$0xff]  ;;  %v683_v59 = vld [vmem:[#allocation4 + $0x228] sm:$0xff]  ;;  %s1100_s11 = sshll.u32 %s203_s10, 4  ;;  %p1948_p10 = scmp.ne.s32.totalorder %s1941_s22, 0  ;;  %s1888_s11 = int_to_ptr.vmem [resolvable:$true] %s1100_s11 }
  0x41   : > { %1412 = vmatprep.subr.bf16.mxu1 %v1677_v39  ;;  %v1422_v51 = vpack.c.bf16 %v677_v50, %v676_v49  ;;  %v680_v55 = vld [vmem:[#allocation4 + $0x1e0] sm:$0xff]  ;;  %v1431_v60 = vpack.c.bf16 %v683_v59, %v682_v58  ;;  %v400_v62 = vld [vmem:[#allocation4 + $0x90] ss:$8 sm:$0x3]  ;;  %v918_v36 = vld [vmem:[#allocation4 + $0x348] sm:$0xff]  ;;  %s1588_s28 = scalar_lea.vmem %s1888_s11, 128 }
  0x42   : > { %1282 = vmatmul.mubr.msk.f32.vlgmr.msra.gmra.mrb[2].mxu0 %vm238_vm2, %v216_v3  ;;  %v1428_v57 = vpack.c.bf16 %v681_v56, %v680_v55  ;;  %v405_v63 = vrot.slane %v400_v62, %v225_v12  ;;  %v911_v26 = vld [vmem:[#allocation4 + $0x2a0] sm:$0xff]  ;;  %v920_v38 = vld [vmem:[#allocation4 + $0x378] sm:$0xff]  ;;  %v921_v41 = vld [vmem:[#allocation4 + $0x390] sm:$0xff]  ;;  %p1589_p8 = scmp.ne.s32.totalorder %s1888_s11, %s1588_s28  ;;  %s1678_s15 = smov [#allocation7]  }
  0x43   : > { %1210 = vmatpush1.msk.msra.mxu0 %vm242_vm1, %v397_v6  ;;  %485 = vmatprep.mubr.f32.mxu0 %v1675_v0  ;;  %v409_v6 = vrot.slane %v400_v62, %v229_v10  ;;  %v923_v44 = vld [vmem:[#allocation4 + $0x3c0] sm:$0xff]  ;;  %v999_v49 = vld [vmem:[#allocation4 + $0x450] sm:$0xff]  ;;  %s1592_s29 = sshll.u32 %s1678_s15, 4  ;;  %s1593_s29 = int_to_ptr.vmem [resolvable:$false] %s1592_s29 }
  0x44   : > { %1284 = vmatprep.subr.mxu0 %v1675_v0  ;;  %1414 = vmatpush3.bf16.msra.mxu1 %v1413_v42  ;;  %v922_v42 = vld [vmem:[#allocation4 + $0x3a8] sm:$0xff]  ;;  %v997_v47 = vld [vmem:[#allocation4 + $0x420] sm:$0xff]  ;;  %v1003_v56 = vld [vmem:[#allocation4 + $0x4b0] sm:$0xff]  ;;  %p1590_p11 = pnand %p1589_p8, %p1948_p10  ;;  %s1594_s26 = scalar_lea.vmem %s1593_s29, 256 }
  0x45   : > { %1415 = vmatprep.subr.bf16.mxu1 %v1677_v39  ;;  %v1452_v43 = vpack.c.bf16 %v922_v42, %v921_v41  ;;  %v1001_v53 = vld [vmem:[#allocation4 + $0x480] sm:$0xff]  ;;  %v1007_v62 = vld [vmem:[#allocation4 + $0x510] sm:$0xff]  ;;  %p1595_p1 = scmp.lt.s32.totalorder %s1888_s11, %s1593_s29  ;;  %p1596_p3 = scmp.lt.s32.totalorder %s1594_s26, %s1588_s28 }
  0x46   : > { %1211 = vmatmul.mubr.msk.f32.vlgmr.msra.gmra.mrb[4].mxu0 %vm238_vm2, %v396_v7  ;;  %v684_v7 = vld [vmem:[#allocation4 + $0x240] ss:$0 sm:$0xff]  ;;  %p1591_p13 = pneg %p1590_p11 }
  0x47   : > { %1286 = vmatprep.mubr.msk.f32.mxu0 %vm1676_vm0, %v1675_v0  ;;  %v1005_v59 = vld [vmem:[#allocation4 + $0x4e0] sm:$0xff]  ;;  %p1597_p5 = por %p1596_p3, %p1595_p1 }
  0x48   : > { %1417 = vmatpush3.bf16.msra.mxu1 %v1416_v45  ;;  %v924_v45 = vld [vmem:[#allocation4 + $0x3d8] sm:$0xff] }
  0x49   : > { %1418 = vmatprep.subr.bf16.mxu1 %v1677_v39  ;;  %v1455_v46 = vpack.c.bf16 %v924_v45, %v923_v44  ;;  %p1598_p6 = pnand %p1597_p5, %p1591_p13 }
  0x4c   : > { %1420 = vmatpush3.bf16.msra.mxu1 %v1419_v48  ;;  %v998_v48 = vld [vmem:[#allocation4 + $0x438] sm:$0xff] }
  0x4d   : > { %1421 = vmatprep.subr.bf16.mxu1 %v1677_v39  ;;  %v1458_v50 = vpack.c.bf16 %v998_v48, %v997_v47 }
  0x50   : > { %1423 = vmatpush3.bf16.msra.mxu1 %v1422_v51  ;;  %v1000_v51 = vld [vmem:[#allocation4 + $0x468] sm:$0xff] }
  0x51   : > { %1424 = vmatprep.subr.bf16.mxu1 %v1677_v39  ;;  %v1461_v52 = vpack.c.bf16 %v1000_v51, %v999_v49 }
  0x54   : > { %1426 = vmatpush3.bf16.msra.mxu1 %v1425_v54  ;;  %v1002_v54 = vld [vmem:[#allocation4 + $0x498] sm:$0xff] }
  0x55   : > { %1427 = vmatprep.subr.bf16.mxu1 %v1677_v39  ;;  %v1464_v55 = vpack.c.bf16 %v1002_v54, %v1001_v53 }
  0x58   : > { %1429 = vmatpush3.bf16.msra.mxu1 %v1428_v57  ;;  %v1004_v57 = vld [vmem:[#allocation4 + $0x4c8] sm:$0xff] }
  0x59   : > { %1430 = vmatprep.subr.bf16.mxu1 %v1677_v39  ;;  %v1467_v58 = vpack.c.bf16 %v1004_v57, %v1003_v56 }
  0x5c   : > { %1432 = vmatpush3.bf16.msra.mxu1 %v1431_v60  ;;  %v1006_v60 = vld [vmem:[#allocation4 + $0x4f8] sm:$0xff] }
  0x5d   : > { %1457 = vmatprep.subr.bf16.mxu1 %v1677_v39 }
 0x111   : > { %v318_v15 = vpop.f32.mrb[0].mxu0 }
 0x112   : > { %v320_v17 = vpop.f32.mrb[1].mxu0  ;;  %v319_v21 = vadd.f32 %v318_v15, %v226_v16 }
 0x113   : > { %v321_v19 = vadd.f32 %v320_v17, %v230_v14 }
 0x115   : > { %1285 = vmatpush3.xpose.msra.mxu0 %v321_v19  ;;  %v389_v20 = vpop.f32.mrb[2].mxu0 }
 0x116   : > { %v390_v22 = vadd.f32 %v389_v20, %v234_v18  ;;  %v1283_v23 = vpop.f32.mrb[3].mxu0  ;;  %1289 = vmatprep.subr.mxu0 %v1675_v0 }
 0x118   : > { %1287 = vmatmul.mubr.f32.vlgmr.msra.gmra.mrb[6].mxu0 %v319_v21  ;;  %v909_v21 = vld [vmem:[#allocation4 + $0x270] sm:$0xff] }
 0x119   : > { %1290 = vmatpush3.msra.mxu0 %v390_v22  ;;  %1291 = vmatprep.mubr.msk.f32.mxu0 %vm1676_vm0, %v1675_v0  ;;  %v1831_v24 = vpop.f32.mrb[4].mxu0  ;;  %v910_v22 = vld [vmem:[#allocation4 + $0x288] sm:$0xff] }
 0x11a   : > { %1329 = vmatprep.subr.mxu0 %v1675_v0  ;;  %v1833_v25 = vpop.f32.mrb[5].mxu0  ;;  %v488_v3 = vadd.f32 %v1831_v24, %v405_v63  ;;  %v1434_v24 = vpack.c.bf16 %v910_v22, %v909_v21  ;;  %v1008_v63 = vld [vmem:[#allocation4 + $0x528] sm:$0xff] }
 0x11b   : > { %v490_v13 = vadd.f32 %v1833_v25, %v409_v6 }
 0x1eb   : > { %v569_v27 = vpop.f32.mrb[6].mxu0 }
 0x1ec   : > { %v580_v28 = vsel %vm579_vm3, %v569_v27, -1e+30  ;;  %v1288_v29 = vpop.f32.mrb[7].mxu0  ;;  %v912_v27 = vld [vmem:[#allocation4 + $0x2b8] sm:$0xff] }
 0x1ed   : > { %v582_v30 = vsel %vm581_vm4, %v580_v28, -inf  ;;  %v913_v29 = vld [vmem:[#allocation4 + $0x2d0] sm:$0xff] }
 0x1ee   : > { %583 = vmax.xlane.f32.xlu0 %v582_v30  ;;  %v914_v30 = vld [vmem:[#allocation4 + $0x2e8] sm:$0xff] }
 0x27b   : > { %v584_v31 = vpop.xlane.xlu0 %583 }
 0x27c   : > { %v585_v32 = vsub.f32 %v580_v28, %v584_v31  ;;  %v1437_v28 = vpack.c.bf16 %v912_v27, %v911_v26  ;;  %v1440_v31 = vpack.c.bf16 %v914_v30, %v913_v29 }
 0x27e   : > { %v586_v33 = vmul.f32 1.442695, %v585_v32  ;;  %v915_v32 = vld [vmem:[#allocation4 + $0x300] sm:$0xff] }
 0x280   : > { %1552 = vpow2.f32 %v586_v33  ;;  %v916_v33 = vld [vmem:[#allocation4 + $0x318] sm:$0xff] }
 0x28a   : > { %v1553_v34 = vpop.eup %1552 }
 0x28b   : > { %v588_v35 = vsel %vm581_vm4, %v1553_v34, 0.0 }
 0x28c   : > { %589 = vadd.xlane.f32.xlu0 %v588_v35  ;;  %v917_v35 = vld [vmem:[#allocation4 + $0x330] sm:$0xff] }
 0x28d   : > { %v1446_v37 = vpack.c.bf16 %v918_v36, %v917_v35 }
 0x319   : > { %v590_v61 = vpop.xlane.xlu0 %589 }
 0x31a   : > { %1554 = vrcp.f32 %v590_v61  ;;  %v1470_v61 = vpack.c.bf16 %v1006_v60, %v1005_v59 }
 0x324   : > { %v1555_v1 = vpop.eup %1554 }
 0x325   : > { %v592_v2 = vmul.f32 %v1555_v1, %v1553_v34  ;;  %v1443_v34 = vpack.c.bf16 %v916_v33, %v915_v32  ;;  %v1473_v1 = vpack.c.bf16 %v1008_v63, %v1007_v62 }
 0x327   : > { %1292 = vmatmul.mubr.msk.f32.vlgmr.msra.gmra.mrb[8].mxu0 %vm581_vm4, %v592_v2  ;;  %v1009_v2 = vld [vmem:[#allocation4 + $0x540] sm:$0xff] }
 0x328   : > { %1330 = vmatpush3.xpose.msra.mxu0 %v488_v3  ;;  %1331 = vmatprep.mubr.msk.f32.mxu0 %vm1676_vm0, %v1675_v0  ;;  %v1010_v3 = vld [vmem:[#allocation4 + $0x558] sm:$0xff] }
 0x329   : > { %1334 = vmatprep.subr.mxu0 %v1675_v0 }
 0x3fa   : > { %v662_v4 = vpop.f32.mrb[8].mxu0 }
 0x3fb   : > { %v1293_v5 = vpop.f32.mrb[9].mxu0  ;;  %1327 = vmatmul.mubr.f32.vlgmr.msra.gmra.mrb[0].mxu1 %v662_v4  ;;  %v1476_v4 = vpack.c.bf16 %v1010_v3, %v1009_v2 }
 0x3fc   : > { %1406 = vmatprep.mubr.msk.f32.mxu1 %vm1676_vm0, %v1675_v0  ;;  %1459 = vmatpush3.bf16.msra.mxu1 %v1458_v50 }
 0x3fd   : > { %1460 = vmatprep.subr.bf16.mxu1 %v1677_v39 }
 0x400   : > { %1462 = vmatpush3.bf16.msra.mxu1 %v1461_v52 }
 0x401   : > { %1463 = vmatprep.subr.bf16.mxu1 %v1677_v39 }
 0x404   : > { %1465 = vmatpush3.bf16.msra.mxu1 %v1464_v55 }
 0x405   : > { %1466 = vmatprep.subr.bf16.mxu1 %v1677_v39 }
 0x408   : > { %1468 = vmatpush3.bf16.msra.mxu1 %v1467_v58 }
 0x409   : > { %1469 = vmatprep.subr.bf16.mxu1 %v1677_v39 }
 0x40c   : > { %1471 = vmatpush3.bf16.msra.mxu1 %v1470_v61 }
 0x40d   : > { %1472 = vmatprep.subr.bf16.mxu1 %v1677_v39 }
 0x410   : > { %1474 = vmatpush3.bf16.msra.mxu1 %v1473_v1 }
 0x411   : > { %1475 = vmatprep.subr.bf16.mxu1 %v1677_v39 }
 0x414   : > { %1477 = vmatpush3.bf16.msra.mxu1 %v1476_v4 }
 0x415   : > { %1478 = vmatprep.subr.bf16.mxu1 %v1677_v39 }
 0x4ce   : > { %v751_v8 = vpop.f32.mrb[0].mxu1 }
 0x4cf   : > { %v752_v11 = vadd.f32 %v751_v8, %v684_v7  ;;  %v1328_v12 = vpop.f32.mrb[1].mxu1  ;;  %v1011_v7 = vld [vmem:[#allocation4 + $0x570] sm:$0xff]  ;;  %v1012_v8 = vld [vmem:[#allocation4 + $0x588] sm:$0xff] }
 0x4d0   : > { %v925_v12 = vld [vmem:[#allocation4 + $0x3f0] ss:$0 sm:$0xff] }
 0x4d1   : > { %1332 = vmatmul.mubr.f32.vlgmr.msra.gmra.mrb[10].mxu0 %v752_v11  ;;  %v1479_v11 = vpack.c.bf16 %v1012_v8, %v1011_v7 }
 0x4d2   : > { %1335 = vmatpush3.msra.mxu0 %v490_v13  ;;  %1336 = vmatprep.mubr.msk.f32.mxu0 %vm1676_vm0, %v1675_v0 }
 0x4d3   : > { %1433 = vmatprep.subr.bf16.mxu0 %v1677_v39  ;;  %1480 = vmatpush3.bf16.msra.mxu1 %v1479_v11 }
 0x5a4   : > { %v821_v14 = vpop.f32.mrb[10].mxu0 }
 0x5a5   : > { %v1333_v15 = vpop.f32.mrb[11].mxu0  ;;  %v825_v16 = vsel %vm581_vm4, %v821_v14, -inf }
 0x5a6   : > { %826 = vmax.xlane.f32.xlu1 %v825_v16 }
 0x633   : > { %v827_v9 = vpop.xlane.xlu1 %826 }
 0x634   : > { %v828_v10 = vsub.f32 %v821_v14, %v827_v9  ;;  %v1013_v9 = vld [vmem:[#allocation4 + $0x5a0] ss:$0 sm:$0xff] }
 0x636   : > { %v829_v17 = vmul.f32 1.442695, %v828_v10 }
 0x638   : > { %1556 = vpow2.f32 %v829_v17 }
 0x642   : > { %v1557_v18 = vpop.eup %1556 }
 0x643   : > { %v831_v19 = vsel %vm581_vm4, %v1557_v18, 0.0 }
 0x644   : > { %832 = vadd.xlane.f32.xlu1 %v831_v19 }
 0x6d1   : > { %v833_v20 = vpop.xlane.xlu1 %832 }
 0x6d2   : > { %1558 = vrcp.f32 %v833_v20 }
 0x6dc   : > { %v1559_v23 = vpop.eup %1558 }
 0x6dd   : > { %v835_v25 = vmul.f32 %v1559_v23, %v1557_v18 }
 0x6df   : > { %1337 = vmatmul.mubr.msk.f32.vlgmr.msra.gmra.mrb[12].mxu0 %vm581_vm4, %v835_v25 }
 0x6e0   : > { %1435 = vmatpush3.bf16.msra.mxu0 %v1434_v24  ;;  %1371 = vmatprep.mubr.msk.f32.mxu0 %vm1676_vm0, %v1675_v0  ;;  %v919_v0 = vld [vmem:[#allocation4 + $0x360] sm:$0xff] }
 0x6e1   : > { %1436 = vmatprep.subr.bf16.mxu0 %v1677_v39  ;;  %v1449_v40 = vpack.c.bf16 %v920_v38, %v919_v0 }
 0x6e4   : > { %1438 = vmatpush3.bf16.msra.mxu0 %v1437_v28 }
 0x6e5   : > { %1439 = vmatprep.subr.bf16.mxu0 %v1677_v39 }
 0x6e8   : > { %1441 = vmatpush3.bf16.msra.mxu0 %v1440_v31 }
 0x6e9   : > { %1442 = vmatprep.subr.bf16.mxu0 %v1677_v39 }
 0x6ec   : > { %1444 = vmatpush3.bf16.msra.mxu0 %v1443_v34 }
 0x6ed   : > { %1445 = vmatprep.subr.bf16.mxu0 %v1677_v39 }
 0x6f0   : > { %1447 = vmatpush3.bf16.msra.mxu0 %v1446_v37 }
 0x6f1   : > { %1448 = vmatprep.subr.bf16.mxu0 %v1677_v39 }
 0x6f4   : > { %1450 = vmatpush3.bf16.msra.mxu0 %v1449_v40 }
 0x6f5   : > { %1451 = vmatprep.subr.bf16.mxu0 %v1677_v39 }
 0x6f8   : > { %1453 = vmatpush3.bf16.msra.mxu0 %v1452_v43 }
 0x6f9   : > { %1454 = vmatprep.subr.bf16.mxu0 %v1677_v39 }
 0x6fc   : > { %1456 = vmatpush3.bf16.msra.mxu0 %v1455_v46 }
 0x7b2   : > { %v905_v5 = vpop.f32.mrb[12].mxu0 }
 0x7b3   : > { %v1338_v6 = vpop.f32.mrb[13].mxu0  ;;  %1372 = vmatmul.mubr.f32.vlgmr.msra.gmra.mrb[14].mxu0 %v905_v5 }
 0x886   : > { %v992_v13 = vpop.f32.mrb[14].mxu0 }
 0x887   : > { %v993_v14 = vadd.f32 %v992_v13, %v925_v12  ;;  %v1373_v15 = vpop.f32.mrb[15].mxu0 }
 0x889   : > { %v996_v16 = vmax.f32 %v993_v14, 0.0 }
 0x88b   : > { %1407 = vmatmul.mubr.f32.vlgmr.msra.gmra.mrb[2].mxu1 %v996_v16 }
 0x95e   : > { %v1080_v39 = vpop.f32.mrb[2].mxu1 }
 0x95f   : > { %v1081_v10 = vadd.f32 %v1080_v39, %v1013_v9  ;;  %v1408_v17 = vpop.f32.mrb[3].mxu1 }
 0x961   : > { %1084 = vst [vmem:[%s203_s10] sm:$0xff] %v1081_v10 }
 0x962   : > { %1601 = shalt.err (!%p1598_p6)
}
 0x963   : > { %s1602_s30 = scalar_lea.hbm %s1886_s21, 128  ;;  %s1606_s5 = scalar_lea.hbm %s1936_s3, 256 }
 0x964   : > { %p1603_p7 = scmp.ne.s32.totalorder %s1886_s21, %s1602_s30  ;;  %p1607_p0 = scmp.lt.u32.totalorder %s1886_s21, %s1936_s3 }
 0x965   : > { %p1608_p2 = scmp.lt.u32.totalorder %s1606_s5, %s1602_s30  ;;  %p1610_p8 = scmp.lt.u32.totalorder %s1602_s30, %s1886_s21 }
 0x966   : > { %p1604_p9 = pnand %p1603_p7, %p1948_p10 }
 0x967   : > { %p1609_p4 = por %p1608_p2, %p1607_p0 }
 0x968   : > { %p1605_p12 = pneg %p1604_p9 }
 0x969   : > { %p1611_p11 = por %p1610_p8, %p1609_p4 }
 0x96b   : > { %p1612_p13 = pnand %p1611_p11, %p1605_p12 }
 0x96d   : > { %1615 = shalt.err (!%p1612_p13)
}
 0x96e   : > { %1485 = dma.vmem_to_hbm [thread:$0]  (%p1948_p10), %s1888_s11, 128, %s1886_s21, %s1086_s23  }
 0x96f PF: > { %p1497_p1 = scmp.ge.s32.totalorder %s1670_s17, 2  ;;  %s1112_s8 = sand.u32 1, %s1650_s12  }
 0x970   : > { %p1949_p3 = scmp.ne.s32.totalorder %s1942_s24, 0  ;;  %s1113_s9 = scalar_lea.sflag [#allocation6], %s1112_s8 }
 0x972   : > { %p1492_p5 = pnand %p1497_p1, %p1949_p3 }
 0x974   : > { %1645 = dma.done.wait (!%p1492_p5), %s1113_s9, 128  }
 0x975   : > { %1647 = vsyncadd (!%p1492_p5), %s1113_s9, 4294967168  ;;  %s17_s17 = sadd.s32 1, %s1670_s17   ;;  %s1950_s12 = smov %s1654_s13 }
 0x976   : > { %p14_p6 = scmp.ge.s32.totalorder %s17_s17, 4   ;;  %s1951_s13 = smov %s1658_s14 }
 0x977   : > { %s1952_s14 = smov %s1752_s25  ;;  %s1953_s15 = smov %s1666_s16 }
 0x978   : > { %s1954_s16 = smov %s1956_s20  ;;  %16 = sbr.rel (!%p14_p6) target bundleno = 5 (0x5), region = 82 }
 0x97f   :  { %1118 = vsyncpa [#allocation5], 1 }
 0x980   :  { %1120 = vsyncpa [#allocation5 + $0x1], 1 }
 0x981   :  { %1121 = vsyncpa [#allocation6], 1 }
 0x982   :  { %1123 = vsyncpa [#allocation6 + $0x1], 1 }

</bundles_post_ra>
